<compile_context>
chip_gen: v6e
topology: v6e:2x2x1
jax: 0.10.0
libtpu: 0.0.40
codegen_flags: <defaults>
</compile_context>

<pallas_src>
import jax
import jax.numpy as jnp
from jax.experimental import pallas as pl
from jax.experimental.pallas import tpu as pltpu

D_MODEL = 32
NUM_HEADS = 4
D_FF = 64
SEQ = 8
BATCH = 2
D_K = D_MODEL // NUM_HEADS
LN_EPS = 1e-5


def _layernorm(y, gamma, beta):
    mean = jnp.mean(y, axis=-1, keepdims=True)
    var = jnp.mean((y - mean) ** 2, axis=-1, keepdims=True)
    return (y - mean) * jax.lax.rsqrt(var + LN_EPS) * gamma + beta


def transformer_block_kernel(
    x_ref,      # (B*S, D)      activations
    wqkv_ref,   # (D, 3*D)      fused [wq | wk | wv]
    wo_ref,     # (D, D)        output projection
    w1_ref,     # (D, D_FF)
    w2_ref,     # (D_FF, D)
    slab_ref,   # (8, 3*D)      rows = [bqkv, bo, g1, be1, b1, b2, g2, be2] (lane-padded)
    out_ref,    # (B*S, D)
):
    x = x_ref[...]                                   # (16, 32) f32

    slab = slab_ref[...]
    bqkv = slab[0:1, :]                              # (1, 96)
    bo   = slab[1:2, :D_MODEL]
    g1   = slab[2:3, :D_MODEL]
    be1  = slab[3:4, :D_MODEL]
    b1   = slab[4:5, :D_FF]
    b2   = slab[5:6, :D_MODEL]
    g2   = slab[6:7, :D_MODEL]
    be2  = slab[7:8, :D_MODEL]

    # ---- fused QKV projection: one (16,32)x(32,96) MXU matmul, bias folded in ----
    qkv = jnp.dot(x, wqkv_ref[...], preferred_element_type=jnp.float32) + bqkv  # (16, 96)
    qkv3 = qkv.reshape(BATCH, SEQ, 3 * D_MODEL)      # leading-dim split only

    inv_sqrt_dk = 1.0 / (D_K ** 0.5)
    ctx_heads = []
    for h in range(NUM_HEADS):                       # static unroll; per-head lane slices
        lo = h * D_K
        qh = qkv3[:, :, lo:lo + D_K] * inv_sqrt_dk               # (B, S, dk)
        kh = qkv3[:, :, D_MODEL + lo:D_MODEL + lo + D_K]
        vh = qkv3[:, :, 2 * D_MODEL + lo:2 * D_MODEL + lo + D_K]

        s = jnp.einsum("bqd,bkd->bqk", qh, kh,
                       preferred_element_type=jnp.float32)       # (B, S, S)
        s = s - jnp.max(s, axis=-1, keepdims=True)
        p = jnp.exp(s)
        p = p / jnp.sum(p, axis=-1, keepdims=True)               # exact divide
        ctx_heads.append(jnp.einsum("bqk,bkd->bqd", p, vh,
                                    preferred_element_type=jnp.float32))

    # Lane-concatenate head contexts back to (B*S, D) (~2 vregs), then one fused
    # (16,32)x(32,32) output-projection matmul.
    ctx = jnp.concatenate(ctx_heads, axis=-1).reshape(BATCH * SEQ, D_MODEL)
    attn = jnp.dot(ctx, wo_ref[...], preferred_element_type=jnp.float32) + bo

    # ---- residual + LayerNorm 1 (dropout = identity in eval) ----
    h1 = _layernorm(x + attn, g1, be1)

    # ---- feed-forward: Linear -> ReLU -> Linear over all rows at once ----
    ff = jnp.dot(h1, w1_ref[...], preferred_element_type=jnp.float32) + b1
    ff = jnp.maximum(ff, 0.0)
    ff = jnp.dot(ff, w2_ref[...], preferred_element_type=jnp.float32) + b2

    # ---- residual + LayerNorm 2 ----
    out_ref[...] = _layernorm(h1 + ff, g2, be2).astype(out_ref.dtype)


def pack_params(p):
    """Host-side one-time repack: fuse QKV columns, fold every small vector into one slab."""
    wqkv = jnp.concatenate([p["wq"], p["wk"], p["wv"]], axis=1)        # (32, 96)
    bqkv = jnp.concatenate([p["bq"], p["bk"], p["bv"]], axis=1)        # (1, 96)

    width = 3 * D_MODEL
    def pad(row):                                                       # (1, n) -> (1, 96)
        return jnp.pad(row, ((0, 0), (0, width - row.shape[1])))

    slab = jnp.concatenate(
        [bqkv, pad(p["bo"]), pad(p["g1"]), pad(p["be1"]),
         pad(p["b1"]), pad(p["b2"]), pad(p["g2"]), pad(p["be2"])],
        axis=0,
    )                                                                   # (8, 96)

    return {"wqkv": wqkv, "wo": p["wo"], "w1": p["w1"], "w2": p["w2"], "slab": slab}


def transformer_block(x, packed):
    B, S, D = x.shape
    x2 = x.reshape(B * S, D)

    def full_spec(shape):
        n = len(shape)
        return pl.BlockSpec(shape, lambda i, _n=n: (0,) * _n)

    args = [x2, packed["wqkv"], packed["wo"], packed["w1"], packed["w2"], packed["slab"]]

    out2 = pl.pallas_call(
        transformer_block_kernel,
        out_shape=jax.ShapeDtypeStruct((B * S, D), x.dtype),
        grid=(1,),                                   # whole forward in one grid step
        in_specs=[full_spec(a.shape) for a in args],
        out_specs=full_spec((B * S, D)),
        compiler_params=pltpu.CompilerParams(dimension_semantics=("arbitrary",)),
    )(*args)
    return out2.reshape(B, S, D)


def init_params(key):
    ks = jax.random.split(key, 16)
    scale_d = 1.0 / (D_MODEL ** 0.5)
    scale_f = 1.0 / (D_FF ** 0.5)
    return {
        "wq": jax.random.normal(ks[0], (D_MODEL, D_MODEL), jnp.float32) * scale_d,
        "bq": jax.random.normal(ks[1], (1, D_MODEL), jnp.float32) * 0.02,
        "wk": jax.random.normal(ks[2], (D_MODEL, D_MODEL), jnp.float32) * scale_d,
        "bk": jax.random.normal(ks[3], (1, D_MODEL), jnp.float32) * 0.02,
        "wv": jax.random.normal(ks[4], (D_MODEL, D_MODEL), jnp.float32) * scale_d,
        "bv": jax.random.normal(ks[5], (1, D_MODEL), jnp.float32) * 0.02,
        "wo": jax.random.normal(ks[6], (D_MODEL, D_MODEL), jnp.float32) * scale_d,
        "bo": jax.random.normal(ks[7], (1, D_MODEL), jnp.float32) * 0.02,
        "g1": jnp.ones((1, D_MODEL), jnp.float32),
        "be1": jnp.zeros((1, D_MODEL), jnp.float32),
        "w1": jax.random.normal(ks[8], (D_MODEL, D_FF), jnp.float32) * scale_d,
        "b1": jax.random.normal(ks[9], (1, D_FF), jnp.float32) * 0.02,
        "w2": jax.random.normal(ks[10], (D_FF, D_MODEL), jnp.float32) * scale_f,
        "b2": jax.random.normal(ks[11], (1, D_MODEL), jnp.float32) * 0.02,
        "g2": jnp.ones((1, D_MODEL), jnp.float32),
        "be2": jnp.zeros((1, D_MODEL), jnp.float32),
    }


def reference(x, p):
    def ln(y, g, b):
        m = jnp.mean(y, -1, keepdims=True)
        v = jnp.mean((y - m) ** 2, -1, keepdims=True)
        return (y - m) / jnp.sqrt(v + LN_EPS) * g + b

    B, S, D = x.shape
    q = x @ p["wq"] + p["bq"]
    k = x @ p["wk"] + p["bk"]
    v = x @ p["wv"] + p["bv"]

    def heads(t):
        return t.reshape(B, S, NUM_HEADS, D_K).transpose(0, 2, 1, 3)

    Q, K, V = heads(q), heads(k), heads(v)
    sc = jnp.einsum("bhqd,bhkd->bhqk", Q, K) / jnp.sqrt(jnp.float32(D_K))
    a = jax.nn.softmax(sc, axis=-1)
    ctx = jnp.einsum("bhqk,bhkd->bhqd", a, V).transpose(0, 2, 1, 3).reshape(B, S, D)
    attn = ctx @ p["wo"] + p["bo"]
    h1 = ln(x + attn, p["g1"], p["be1"])
    ff = jnp.maximum(h1 @ p["w1"] + p["b1"], 0.0) @ p["w2"] + p["b2"]
    return ln(h1 + ff, p["g2"], p["be2"])


if __name__ == "__main__":
    key = jax.random.PRNGKey(0)
    kx, kp = jax.random.split(key)
    x = jax.random.normal(kx, (BATCH, SEQ, D_MODEL), jnp.float32)
    params = init_params(kp)
    packed = pack_params(params)

    out = jax.block_until_ready(transformer_block(x, packed))

    # True-f32 reference (avoid default bf16-pass matmul precision in the baseline).
    with jax.default_matmul_precision("highest"):
        ref = reference(x, params)

    assert out.shape == (BATCH, SEQ, D_MODEL)
    max_err = float(jnp.max(jnp.abs(out - ref)))
    assert jnp.allclose(out, ref, atol=2e-3, rtol=2e-3), max_err
    print("KERNEL_OK")
</pallas_src>

<mosaic_0001>
module attributes {stable_mosaic.version = 11 : i64} {
  func.func @transformer_block_kernel(%arg0: i32, %arg1: memref<16x32xf32, #tpu.memory_space<vmem>>, %arg2: memref<32x96xf32, #tpu.memory_space<vmem>>, %arg3: memref<32x32xf32, #tpu.memory_space<vmem>>, %arg4: memref<32x64xf32, #tpu.memory_space<vmem>>, %arg5: memref<64x32xf32, #tpu.memory_space<vmem>>, %arg6: memref<8x96xf32, #tpu.memory_space<vmem>>, %arg7: memref<16x32xf32, #tpu.memory_space<vmem>>) attributes {dimension_semantics = [#tpu.dimension_semantics<arbitrary>], iteration_bounds = array<i64: 1>, scalar_prefetch = 0 : i64, scratch_operands = 0 : i64, tpu.core_type = #tpu.core_type<tc>, window_params = [{pipeline_mode = #tpu.pipeline_mode<synchronous>, transform_indices = @transform_0, window_bounds = array<i64: 16, 32>}, {pipeline_mode = #tpu.pipeline_mode<synchronous>, transform_indices = @transform_1, window_bounds = array<i64: 32, 96>}, {pipeline_mode = #tpu.pipeline_mode<synchronous>, transform_indices = @transform_2, window_bounds = array<i64: 32, 32>}, {pipeline_mode = #tpu.pipeline_mode<synchronous>, transform_indices = @transform_3, window_bounds = array<i64: 32, 64>}, {pipeline_mode = #tpu.pipeline_mode<synchronous>, transform_indices = @transform_4, window_bounds = array<i64: 64, 32>}, {pipeline_mode = #tpu.pipeline_mode<synchronous>, transform_indices = @transform_5, window_bounds = array<i64: 8, 96>}, {pipeline_mode = #tpu.pipeline_mode<synchronous>, transform_indices = @transform_6, window_bounds = array<i64: 16, 32>}]} {
    %c0 = arith.constant 0 : index
    %c0_0 = arith.constant 0 : index
    %0 = vector.load %arg1[%c0, %c0_0] : memref<16x32xf32, #tpu.memory_space<vmem>>, vector<16x32xf32>
    %c0_1 = arith.constant 0 : index
    %c0_2 = arith.constant 0 : index
    %1 = vector.load %arg6[%c0_1, %c0_2] : memref<8x96xf32, #tpu.memory_space<vmem>>, vector<8x96xf32>
    %2 = vector.extract_strided_slice %1 {offsets = [0, 0], sizes = [1, 96], strides = [1, 1]} : vector<8x96xf32> to vector<1x96xf32>
    %3 = vector.extract_strided_slice %1 {offsets = [1, 0], sizes = [1, 32], strides = [1, 1]} : vector<8x96xf32> to vector<1x32xf32>
    %4 = vector.extract_strided_slice %1 {offsets = [2, 0], sizes = [1, 32], strides = [1, 1]} : vector<8x96xf32> to vector<1x32xf32>
    %5 = vector.extract_strided_slice %1 {offsets = [3, 0], sizes = [1, 32], strides = [1, 1]} : vector<8x96xf32> to vector<1x32xf32>
    %6 = vector.extract_strided_slice %1 {offsets = [4, 0], sizes = [1, 64], strides = [1, 1]} : vector<8x96xf32> to vector<1x64xf32>
    %7 = vector.extract_strided_slice %1 {offsets = [5, 0], sizes = [1, 32], strides = [1, 1]} : vector<8x96xf32> to vector<1x32xf32>
    %8 = vector.extract_strided_slice %1 {offsets = [6, 0], sizes = [1, 32], strides = [1, 1]} : vector<8x96xf32> to vector<1x32xf32>
    %9 = vector.extract_strided_slice %1 {offsets = [7, 0], sizes = [1, 32], strides = [1, 1]} : vector<8x96xf32> to vector<1x32xf32>
    %c0_3 = arith.constant 0 : index
    %c0_4 = arith.constant 0 : index
    %10 = vector.load %arg2[%c0_3, %c0_4] : memref<32x96xf32, #tpu.memory_space<vmem>>, vector<32x96xf32>
    %cst = arith.constant dense<0.000000e+00> : vector<16x96xf32>
    %11 = tpu.matmul %0, %10, %cst {dimension_numbers = #tpu.dot_dimension_numbers<[1], [0], [0], [1], [0, 0, 1, 1], [], []>} : vector<16x32xf32>, vector<32x96xf32>, vector<16x96xf32> -> vector<16x96xf32>
    %12 = vector.broadcast %2 : vector<1x96xf32> to vector<16x96xf32>
    %13 = arith.addf %11, %12 : vector<16x96xf32>
    %14 = vector.shape_cast %13 : vector<16x96xf32> to vector<2x8x96xf32>
    %15 = vector.extract_strided_slice %14 {offsets = [0, 0, 0], sizes = [2, 8, 8], strides = [1, 1, 1]} : vector<2x8x96xf32> to vector<2x8x8xf32>
    %cst_5 = arith.constant 0.353553385 : f32
    %16 = vector.broadcast %cst_5 : f32 to vector<2x8x8xf32>
    %17 = arith.mulf %15, %16 : vector<2x8x8xf32>
    %18 = vector.extract_strided_slice %14 {offsets = [0, 0, 32], sizes = [2, 8, 8], strides = [1, 1, 1]} : vector<2x8x96xf32> to vector<2x8x8xf32>
    %19 = vector.extract_strided_slice %14 {offsets = [0, 0, 64], sizes = [2, 8, 8], strides = [1, 1, 1]} : vector<2x8x96xf32> to vector<2x8x8xf32>
    "tpu.trace_start"() <{level = 10 : i32, message = "bqd,bkd->bqk"}> : () -> ()
    %cst_6 = arith.constant dense<0.000000e+00> : vector<2x8x8xf32>
    %20 = tpu.matmul %17, %18, %cst_6 {dimension_numbers = #tpu.dot_dimension_numbers<[2], [2], [1], [1], [0, 0, 0, 1, 1, 1], [0], [0]>} : vector<2x8x8xf32>, vector<2x8x8xf32>, vector<2x8x8xf32> -> vector<2x8x8xf32>
    "tpu.trace_stop"() : () -> ()
    %cst_7 = arith.constant dense<0xFF800000> : vector<2x8xf32>
    %21 = vector.multi_reduction <maximumf>, %20, %cst_7 [2] : vector<2x8x8xf32> to vector<2x8xf32>
    %22 = vector.shape_cast %21 : vector<2x8xf32> to vector<2x8x1xf32>
    %23 = vector.broadcast %22 : vector<2x8x1xf32> to vector<2x8x8xf32>
    %24 = arith.subf %20, %23 : vector<2x8x8xf32>
    %25 = math.exp %24 : vector<2x8x8xf32>
    %cst_8 = arith.constant dense<0.000000e+00> : vector<2x8xf32>
    %26 = vector.multi_reduction <add>, %25, %cst_8 [2] : vector<2x8x8xf32> to vector<2x8xf32>
    %27 = vector.shape_cast %26 : vector<2x8xf32> to vector<2x8x1xf32>
    %28 = vector.broadcast %27 : vector<2x8x1xf32> to vector<2x8x8xf32>
    %29 = arith.divf %25, %28 : vector<2x8x8xf32>
    "tpu.trace_start"() <{level = 10 : i32, message = "bqk,bkd->bqd"}> : () -> ()
    %cst_9 = arith.constant dense<0.000000e+00> : vector<2x8x8xf32>
    %30 = tpu.matmul %29, %19, %cst_9 {dimension_numbers = #tpu.dot_dimension_numbers<[2], [1], [1], [2], [0, 0, 0, 1, 1, 2], [0], [0]>} : vector<2x8x8xf32>, vector<2x8x8xf32>, vector<2x8x8xf32> -> vector<2x8x8xf32>
    "tpu.trace_stop"() : () -> ()
    %31 = vector.extract_strided_slice %14 {offsets = [0, 0, 8], sizes = [2, 8, 8], strides = [1, 1, 1]} : vector<2x8x96xf32> to vector<2x8x8xf32>
    %cst_10 = arith.constant 0.353553385 : f32
    %32 = vector.broadcast %cst_10 : f32 to vector<2x8x8xf32>
    %33 = arith.mulf %31, %32 : vector<2x8x8xf32>
    %34 = vector.extract_strided_slice %14 {offsets = [0, 0, 40], sizes = [2, 8, 8], strides = [1, 1, 1]} : vector<2x8x96xf32> to vector<2x8x8xf32>
    %35 = vector.extract_strided_slice %14 {offsets = [0, 0, 72], sizes = [2, 8, 8], strides = [1, 1, 1]} : vector<2x8x96xf32> to vector<2x8x8xf32>
    "tpu.trace_start"() <{level = 10 : i32, message = "bqd,bkd->bqk"}> : () -> ()
    %cst_11 = arith.constant dense<0.000000e+00> : vector<2x8x8xf32>
    %36 = tpu.matmul %33, %34, %cst_11 {dimension_numbers = #tpu.dot_dimension_numbers<[2], [2], [1], [1], [0, 0, 0, 1, 1, 1], [0], [0]>} : vector<2x8x8xf32>, vector<2x8x8xf32>, vector<2x8x8xf32> -> vector<2x8x8xf32>
    "tpu.trace_stop"() : () -> ()
    %cst_12 = arith.constant dense<0xFF800000> : vector<2x8xf32>
    %37 = vector.multi_reduction <maximumf>, %36, %cst_12 [2] : vector<2x8x8xf32> to vector<2x8xf32>
    %38 = vector.shape_cast %37 : vector<2x8xf32> to vector<2x8x1xf32>
    %39 = vector.broadcast %38 : vector<2x8x1xf32> to vector<2x8x8xf32>
    %40 = arith.subf %36, %39 : vector<2x8x8xf32>
    %41 = math.exp %40 : vector<2x8x8xf32>
    %cst_13 = arith.constant dense<0.000000e+00> : vector<2x8xf32>
    %42 = vector.multi_reduction <add>, %41, %cst_13 [2] : vector<2x8x8xf32> to vector<2x8xf32>
    %43 = vector.shape_cast %42 : vector<2x8xf32> to vector<2x8x1xf32>
    %44 = vector.broadcast %43 : vector<2x8x1xf32> to vector<2x8x8xf32>
    %45 = arith.divf %41, %44 : vector<2x8x8xf32>
    "tpu.trace_start"() <{level = 10 : i32, message = "bqk,bkd->bqd"}> : () -> ()
    %cst_14 = arith.constant dense<0.000000e+00> : vector<2x8x8xf32>
    %46 = tpu.matmul %45, %35, %cst_14 {dimension_numbers = #tpu.dot_dimension_numbers<[2], [1], [1], [2], [0, 0, 0, 1, 1, 2], [0], [0]>} : vector<2x8x8xf32>, vector<2x8x8xf32>, vector<2x8x8xf32> -> vector<2x8x8xf32>
    "tpu.trace_stop"() : () -> ()
    %47 = vector.extract_strided_slice %14 {offsets = [0, 0, 16], sizes = [2, 8, 8], strides = [1, 1, 1]} : vector<2x8x96xf32> to vector<2x8x8xf32>
    %cst_15 = arith.constant 0.353553385 : f32
    %48 = vector.broadcast %cst_15 : f32 to vector<2x8x8xf32>
    %49 = arith.mulf %47, %48 : vector<2x8x8xf32>
    %50 = vector.extract_strided_slice %14 {offsets = [0, 0, 48], sizes = [2, 8, 8], strides = [1, 1, 1]} : vector<2x8x96xf32> to vector<2x8x8xf32>
    %51 = vector.extract_strided_slice %14 {offsets = [0, 0, 80], sizes = [2, 8, 8], strides = [1, 1, 1]} : vector<2x8x96xf32> to vector<2x8x8xf32>
    "tpu.trace_start"() <{level = 10 : i32, message = "bqd,bkd->bqk"}> : () -> ()
    %cst_16 = arith.constant dense<0.000000e+00> : vector<2x8x8xf32>
    %52 = tpu.matmul %49, %50, %cst_16 {dimension_numbers = #tpu.dot_dimension_numbers<[2], [2], [1], [1], [0, 0, 0, 1, 1, 1], [0], [0]>} : vector<2x8x8xf32>, vector<2x8x8xf32>, vector<2x8x8xf32> -> vector<2x8x8xf32>
    "tpu.trace_stop"() : () -> ()
    %cst_17 = arith.constant dense<0xFF800000> : vector<2x8xf32>
    %53 = vector.multi_reduction <maximumf>, %52, %cst_17 [2] : vector<2x8x8xf32> to vector<2x8xf32>
    %54 = vector.shape_cast %53 : vector<2x8xf32> to vector<2x8x1xf32>
    %55 = vector.broadcast %54 : vector<2x8x1xf32> to vector<2x8x8xf32>
    %56 = arith.subf %52, %55 : vector<2x8x8xf32>
    %57 = math.exp %56 : vector<2x8x8xf32>
    %cst_18 = arith.constant dense<0.000000e+00> : vector<2x8xf32>
    %58 = vector.multi_reduction <add>, %57, %cst_18 [2] : vector<2x8x8xf32> to vector<2x8xf32>
    %59 = vector.shape_cast %58 : vector<2x8xf32> to vector<2x8x1xf32>
    %60 = vector.broadcast %59 : vector<2x8x1xf32> to vector<2x8x8xf32>
    %61 = arith.divf %57, %60 : vector<2x8x8xf32>
    "tpu.trace_start"() <{level = 10 : i32, message = "bqk,bkd->bqd"}> : () -> ()
    %cst_19 = arith.constant dense<0.000000e+00> : vector<2x8x8xf32>
    %62 = tpu.matmul %61, %51, %cst_19 {dimension_numbers = #tpu.dot_dimension_numbers<[2], [1], [1], [2], [0, 0, 0, 1, 1, 2], [0], [0]>} : vector<2x8x8xf32>, vector<2x8x8xf32>, vector<2x8x8xf32> -> vector<2x8x8xf32>
    "tpu.trace_stop"() : () -> ()
    %63 = vector.extract_strided_slice %14 {offsets = [0, 0, 24], sizes = [2, 8, 8], strides = [1, 1, 1]} : vector<2x8x96xf32> to vector<2x8x8xf32>
    %cst_20 = arith.constant 0.353553385 : f32
    %64 = vector.broadcast %cst_20 : f32 to vector<2x8x8xf32>
    %65 = arith.mulf %63, %64 : vector<2x8x8xf32>
    %66 = vector.extract_strided_slice %14 {offsets = [0, 0, 56], sizes = [2, 8, 8], strides = [1, 1, 1]} : vector<2x8x96xf32> to vector<2x8x8xf32>
    %67 = vector.extract_strided_slice %14 {offsets = [0, 0, 88], sizes = [2, 8, 8], strides = [1, 1, 1]} : vector<2x8x96xf32> to vector<2x8x8xf32>
    "tpu.trace_start"() <{level = 10 : i32, message = "bqd,bkd->bqk"}> : () -> ()
    %cst_21 = arith.constant dense<0.000000e+00> : vector<2x8x8xf32>
    %68 = tpu.matmul %65, %66, %cst_21 {dimension_numbers = #tpu.dot_dimension_numbers<[2], [2], [1], [1], [0, 0, 0, 1, 1, 1], [0], [0]>} : vector<2x8x8xf32>, vector<2x8x8xf32>, vector<2x8x8xf32> -> vector<2x8x8xf32>
    "tpu.trace_stop"() : () -> ()
    %cst_22 = arith.constant dense<0xFF800000> : vector<2x8xf32>
    %69 = vector.multi_reduction <maximumf>, %68, %cst_22 [2] : vector<2x8x8xf32> to vector<2x8xf32>
    %70 = vector.shape_cast %69 : vector<2x8xf32> to vector<2x8x1xf32>
    %71 = vector.broadcast %70 : vector<2x8x1xf32> to vector<2x8x8xf32>
    %72 = arith.subf %68, %71 : vector<2x8x8xf32>
    %73 = math.exp %72 : vector<2x8x8xf32>
    %cst_23 = arith.constant dense<0.000000e+00> : vector<2x8xf32>
    %74 = vector.multi_reduction <add>, %73, %cst_23 [2] : vector<2x8x8xf32> to vector<2x8xf32>
    %75 = vector.shape_cast %74 : vector<2x8xf32> to vector<2x8x1xf32>
    %76 = vector.broadcast %75 : vector<2x8x1xf32> to vector<2x8x8xf32>
    %77 = arith.divf %73, %76 : vector<2x8x8xf32>
    "tpu.trace_start"() <{level = 10 : i32, message = "bqk,bkd->bqd"}> : () -> ()
    %cst_24 = arith.constant dense<0.000000e+00> : vector<2x8x8xf32>
    %78 = tpu.matmul %77, %67, %cst_24 {dimension_numbers = #tpu.dot_dimension_numbers<[2], [1], [1], [2], [0, 0, 0, 1, 1, 2], [0], [0]>} : vector<2x8x8xf32>, vector<2x8x8xf32>, vector<2x8x8xf32> -> vector<2x8x8xf32>
    "tpu.trace_stop"() : () -> ()
    %79 = tpu.concatenate %30, %46, %62, %78 in 2 : vector<2x8x8xf32>, vector<2x8x8xf32>, vector<2x8x8xf32>, vector<2x8x8xf32> -> vector<2x8x32xf32>
    %80 = vector.shape_cast %79 : vector<2x8x32xf32> to vector<16x32xf32>
    %c0_25 = arith.constant 0 : index
    %c0_26 = arith.constant 0 : index
    %81 = vector.load %arg3[%c0_25, %c0_26] : memref<32x32xf32, #tpu.memory_space<vmem>>, vector<32x32xf32>
    %cst_27 = arith.constant dense<0.000000e+00> : vector<16x32xf32>
    %82 = tpu.matmul %80, %81, %cst_27 {dimension_numbers = #tpu.dot_dimension_numbers<[1], [0], [0], [1], [0, 0, 1, 1], [], []>} : vector<16x32xf32>, vector<32x32xf32>, vector<16x32xf32> -> vector<16x32xf32>
    %83 = vector.broadcast %3 : vector<1x32xf32> to vector<16x32xf32>
    %84 = arith.addf %82, %83 : vector<16x32xf32>
    %85 = arith.addf %0, %84 : vector<16x32xf32>
    %cst_28 = arith.constant dense<0.000000e+00> : vector<16xf32>
    %86 = vector.multi_reduction <add>, %85, %cst_28 [1] : vector<16x32xf32> to vector<16xf32>
    %87 = vector.shape_cast %86 : vector<16xf32> to vector<16x1xf32>
    %cst_29 = arith.constant 3.200000e+01 : f32
    %88 = vector.broadcast %cst_29 : f32 to vector<16x1xf32>
    %89 = arith.divf %87, %88 : vector<16x1xf32>
    %90 = vector.broadcast %89 : vector<16x1xf32> to vector<16x32xf32>
    %91 = arith.subf %85, %90 : vector<16x32xf32>
    %92 = arith.mulf %91, %91 : vector<16x32xf32>
    %cst_30 = arith.constant dense<0.000000e+00> : vector<16xf32>
    %93 = vector.multi_reduction <add>, %92, %cst_30 [1] : vector<16x32xf32> to vector<16xf32>
    %94 = vector.shape_cast %93 : vector<16xf32> to vector<16x1xf32>
    %cst_31 = arith.constant 3.200000e+01 : f32
    %95 = vector.broadcast %cst_31 : f32 to vector<16x1xf32>
    %96 = arith.divf %94, %95 : vector<16x1xf32>
    %97 = vector.broadcast %89 : vector<16x1xf32> to vector<16x32xf32>
    %98 = arith.subf %85, %97 : vector<16x32xf32>
    %cst_32 = arith.constant 9.99999974E-6 : f32
    %99 = vector.broadcast %cst_32 : f32 to vector<16x1xf32>
    %100 = arith.addf %96, %99 : vector<16x1xf32>
    %101 = math.rsqrt %100 : vector<16x1xf32>
    %102 = vector.broadcast %101 : vector<16x1xf32> to vector<16x32xf32>
    %103 = arith.mulf %98, %102 : vector<16x32xf32>
    %104 = vector.broadcast %4 : vector<1x32xf32> to vector<16x32xf32>
    %105 = arith.mulf %103, %104 : vector<16x32xf32>
    %106 = vector.broadcast %5 : vector<1x32xf32> to vector<16x32xf32>
    %107 = arith.addf %105, %106 : vector<16x32xf32>
    %c0_33 = arith.constant 0 : index
    %c0_34 = arith.constant 0 : index
    %108 = vector.load %arg4[%c0_33, %c0_34] : memref<32x64xf32, #tpu.memory_space<vmem>>, vector<32x64xf32>
    %cst_35 = arith.constant dense<0.000000e+00> : vector<16x64xf32>
    %109 = tpu.matmul %107, %108, %cst_35 {dimension_numbers = #tpu.dot_dimension_numbers<[1], [0], [0], [1], [0, 0, 1, 1], [], []>} : vector<16x32xf32>, vector<32x64xf32>, vector<16x64xf32> -> vector<16x64xf32>
    %110 = vector.broadcast %6 : vector<1x64xf32> to vector<16x64xf32>
    %111 = arith.addf %109, %110 : vector<16x64xf32>
    %cst_36 = arith.constant 0.000000e+00 : f32
    %112 = vector.broadcast %cst_36 : f32 to vector<16x64xf32>
    %113 = arith.maximumf %111, %112 : vector<16x64xf32>
    %c0_37 = arith.constant 0 : index
    %c0_38 = arith.constant 0 : index
    %114 = vector.load %arg5[%c0_37, %c0_38] : memref<64x32xf32, #tpu.memory_space<vmem>>, vector<64x32xf32>
    %cst_39 = arith.constant dense<0.000000e+00> : vector<16x32xf32>
    %115 = tpu.matmul %113, %114, %cst_39 {dimension_numbers = #tpu.dot_dimension_numbers<[1], [0], [0], [1], [0, 0, 1, 1], [], []>} : vector<16x64xf32>, vector<64x32xf32>, vector<16x32xf32> -> vector<16x32xf32>
    %116 = vector.broadcast %7 : vector<1x32xf32> to vector<16x32xf32>
    %117 = arith.addf %115, %116 : vector<16x32xf32>
    %118 = arith.addf %107, %117 : vector<16x32xf32>
    %cst_40 = arith.constant dense<0.000000e+00> : vector<16xf32>
    %119 = vector.multi_reduction <add>, %118, %cst_40 [1] : vector<16x32xf32> to vector<16xf32>
    %120 = vector.shape_cast %119 : vector<16xf32> to vector<16x1xf32>
    %cst_41 = arith.constant 3.200000e+01 : f32
    %121 = vector.broadcast %cst_41 : f32 to vector<16x1xf32>
    %122 = arith.divf %120, %121 : vector<16x1xf32>
    %123 = vector.broadcast %122 : vector<16x1xf32> to vector<16x32xf32>
    %124 = arith.subf %118, %123 : vector<16x32xf32>
    %125 = arith.mulf %124, %124 : vector<16x32xf32>
    %cst_42 = arith.constant dense<0.000000e+00> : vector<16xf32>
    %126 = vector.multi_reduction <add>, %125, %cst_42 [1] : vector<16x32xf32> to vector<16xf32>
    %127 = vector.shape_cast %126 : vector<16xf32> to vector<16x1xf32>
    %cst_43 = arith.constant 3.200000e+01 : f32
    %128 = vector.broadcast %cst_43 : f32 to vector<16x1xf32>
    %129 = arith.divf %127, %128 : vector<16x1xf32>
    %130 = vector.broadcast %122 : vector<16x1xf32> to vector<16x32xf32>
    %131 = arith.subf %118, %130 : vector<16x32xf32>
    %cst_44 = arith.constant 9.99999974E-6 : f32
    %132 = vector.broadcast %cst_44 : f32 to vector<16x1xf32>
    %133 = arith.addf %129, %132 : vector<16x1xf32>
    %134 = math.rsqrt %133 : vector<16x1xf32>
    %135 = vector.broadcast %134 : vector<16x1xf32> to vector<16x32xf32>
    %136 = arith.mulf %131, %135 : vector<16x32xf32>
    %137 = vector.broadcast %8 : vector<1x32xf32> to vector<16x32xf32>
    %138 = arith.mulf %136, %137 : vector<16x32xf32>
    %139 = vector.broadcast %9 : vector<1x32xf32> to vector<16x32xf32>
    %140 = arith.addf %138, %139 : vector<16x32xf32>
    %c0_45 = arith.constant 0 : index
    %c0_46 = arith.constant 0 : index
    %141 = vector.load %arg7[%c0_45, %c0_46] : memref<16x32xf32, #tpu.memory_space<vmem>>, vector<16x32xf32>
    tpu.vector_store %arg7[%c0_45, %c0_46], %140 {strides = array<i32>} : memref<16x32xf32, #tpu.memory_space<vmem>>, vector<16x32xf32>,
    return
  }
  func.func @transform_0(%arg0: i32) -> (i32, i32) {
    %c0_i32 = arith.constant 0 : i32
    %c0_i32_0 = arith.constant 0 : i32
    %c0_i32_1 = arith.constant 0 : i32
    return %c0_i32, %c0_i32_0 : i32, i32
  }
  func.func @transform_1(%arg0: i32) -> (i32, i32) {
    %c0_i32 = arith.constant 0 : i32
    %c0_i32_0 = arith.constant 0 : i32
    %c0_i32_1 = arith.constant 0 : i32
    return %c0_i32, %c0_i32_0 : i32, i32
  }
  func.func @transform_2(%arg0: i32) -> (i32, i32) {
    %c0_i32 = arith.constant 0 : i32
    %c0_i32_0 = arith.constant 0 : i32
    %c0_i32_1 = arith.constant 0 : i32
    return %c0_i32, %c0_i32_0 : i32, i32
  }
  func.func @transform_3(%arg0: i32) -> (i32, i32) {
    %c0_i32 = arith.constant 0 : i32
    %c0_i32_0 = arith.constant 0 : i32
    %c0_i32_1 = arith.constant 0 : i32
    return %c0_i32, %c0_i32_0 : i32, i32
  }
  func.func @transform_4(%arg0: i32) -> (i32, i32) {
    %c0_i32 = arith.constant 0 : i32
    %c0_i32_0 = arith.constant 0 : i32
    %c0_i32_1 = arith.constant 0 : i32
    return %c0_i32, %c0_i32_0 : i32, i32
  }
  func.func @transform_5(%arg0: i32) -> (i32, i32) {
    %c0_i32 = arith.constant 0 : i32
    %c0_i32_0 = arith.constant 0 : i32
    %c0_i32_1 = arith.constant 0 : i32
    return %c0_i32, %c0_i32_0 : i32, i32
  }
  func.func @transform_6(%arg0: i32) -> (i32, i32) {
    %c0_i32 = arith.constant 0 : i32
    %c0_i32_0 = arith.constant 0 : i32
    %c0_i32_1 = arith.constant 0 : i32
    return %c0_i32, %c0_i32_0 : i32, i32
  }
}

</mosaic_0001>

<bundles_post_ra>
// kernel: tpu_custom_call.1
= control target key start
LH: loop header
LB: loop body
LE: loop exit
PB: predicated region body
PF: predicated region fallthrough
CT: control target
= control target key end

     0   :  { %11 = vsyncpa [#allocation3], 0  ;;  %s2498_s0 = inlined_call_operand.hbm [shape: f32[16,32], index: 0, kind: input, shape index: {}]   ;;  %s2499_s1 = inlined_call_operand.vmem [shape: f32[32,96], index: 1, kind: input, shape index: {}]   ;;  %s2500_s2 = inlined_call_operand.vmem [shape: f32[32,32], index: 2, kind: input, shape index: {}]   ;;  %s2501_s3 = inlined_call_operand.vmem [shape: f32[32,64], index: 3, kind: input, shape index: {}]   ;;  %s2502_s4 = inlined_call_operand.vmem [shape: f32[64,32], index: 4, kind: input, shape index: {}]   ;;  %s2503_s5 = inlined_call_operand.vmem [shape: f32[8,96], index: 5, kind: input, shape index: {}]   ;;  %s2504_s6 = inlined_call_operand.hbm [shape: f32[16,32], index: 6, kind: output, shape index: {}]  }
   0x1   :  { %12 = vsyncpa [#allocation4], 0  ;;  %s2187_s21 = smov [#allocation2]  }
   0x2   :  { %s18_s22 = sshll.u32 %s2187_s21, 4  ;;  %s19_s22 = int_to_ptr.vmem [resolvable:$true] %s18_s22 }
   0x3   :  { %s2151_s23 = scalar_lea.vmem %s19_s22, 256  ;;  %p2156_p1 = scmp.lt.s32.totalorder %s19_s22, %s19_s22 }
   0x4   :  { %p2152_p0 = scmp.ne.s32.totalorder %s19_s22, %s2151_s23  ;;  %p2157_p2 = scmp.lt.s32.totalorder %s2151_s23, %s2151_s23 }
   0x6   :  { %p2158_p3 = por %p2157_p2, %p2156_p1 }
   0x8   :  { %p2159_p4 = pnand %p2158_p3, %p2152_p0 }
   0xa   :  { %2162 = shalt.err (!%p2159_p4)
}
   0xb   :  { %s2188_s24 = smov 128   ;;  %s2189_s25 = smov 8  }
   0xc   :  { %24 = dma.hbm_to_vmem [thread:$0]  %s2498_s0, 256, %s19_s22, [#allocation3], %s2188_s24, %s2188_s24, %s2189_s25  }
   0xd   :  { %2183 = dma.done.wait [#allocation3], 256  }
   0xe   :  { %2184 = vsyncadd [#allocation3], 4294967040  ;;  %vm49_vm0 = vcmask 261120   ;;  %v44_v0 = vld [vmem:[%s2499_s1 + $0x18] sm:$0xff]  ;;  %v43_v1 = vld [vmem:[%s2499_s1 + $0x10] sm:$0xff]  ;;  %v2190_v6 = vmov 0.0   ;;  %v45_v7 = vlaneseq }
   0xf   :  { %1952 = vmatprep.subr.mxu1 %v44_v0  ;;  %v2253_v2 = vld [vmem:[#allocation2] sm:$0xff]  ;;  %v42_v3 = vld [vmem:[%s2499_s1 + $0x8] sm:$0xff]  ;;  %1973 = vmatprep.subr.mxu0 %v2190_v6  ;;  %vm2191_vm1 = vmmov 0   ;;  %s2192_s12 = smov 96   ;;  %vm136_vm2 = vcmask 64512   ;;  %s2194_s13 = smov 88  }
  0x10   :  { %1953 = vmatpush3.msra.mxu1 %v44_v0  ;;  %1960 = vmatprep.mubr.msk.f32.mxu1 %vm49_vm0, %v2253_v2  ;;  %v41_v4 = vld [vmem:[%s2499_s1] sm:$0xff]  ;;  %v2263_v5 = vld [vmem:[#allocation2 + $0x8] sm:$0xff]  ;;  %v2269_v8 = vshrl.u32 %v45_v7, 7  ;;  %s2195_s14 = smov 120   ;;  %s2196_s15 = smov 56   ;;  %vm1483_vm3 = vcmask 195584  }
  0x11   :  { %1954 = vmatprep.subr.mxu1 %v43_v1  ;;  %1975 = vmatprep.mubr.msk.f32.mxu0 %vm2191_vm1, %v2190_v6  ;;  %v2279_v10 = vld [vmem:[%s2503_s5] sm:$0xff]  ;;  %s2193_s5 = smov 64   ;;  %s2197_s16 = smov 80   ;;  %vm1480_vm4 = vcmask 130048   ;;  %vm1719_vm5 = vcmask 523264  }
  0x12   :  { %1955 = vmatpush3.msra.mxu1 %v43_v1  ;;  %v47_v9 = vsub.s32 0, %v2269_v8  ;;  %s2198_s17 = smov 112   ;;  %s2199_s18 = smov 48  }
  0x13   :  { %1956 = vmatprep.subr.mxu1 %v42_v3  ;;  %s2200_s19 = smov 72   ;;  %s2201_s20 = smov 104  }
  0x14   :  { %1957 = vmatpush3.msra.mxu1 %v42_v3  ;;  %v48_v12 = vrot.slane %v2279_v10, %v47_v9  ;;  %s2202_s21 = smov 40   ;;  %s2203_s22 = smov 16  }
  0x15   :  { %1958 = vmatprep.subr.mxu1 %v41_v4  ;;  %s2204_s9 = smov 24  }
  0x16   :  { %1959 = vmatpush3.msra.mxu1 %v41_v4 }
  0x17   :  { %1961 = vmatmul.mubr.msk.f32.vlgmr.msra.gmra.mxu1 %vm49_vm0, %v2263_v5  ;;  %1963 = vmatprep.subr.mxu1 %v2190_v6 }
  0x18   :  { %1965 = vmatprep.mubr.msk.f32.mxu1 %vm2191_vm1, %v2190_v6 }
  0xd7   :  { %v1962_v11 = vpop.f32.mrf.mxu1 }
  0xd8   :  { %v2285_v15 = vadd.f32 %v1962_v11, %v48_v12 }
  0xd9   :  { %v122_v13 = vpop.f32.mrf.mxu1 }
  0xda   :  { %v2282_v14 = vadd.f32 %v122_v13, %v48_v12  ;;  %v2299_v19 = vmul.f32 0.35355338, %v2285_v15 }
  0xdc   :  { %134 = vrot.lane.b32.xlu0 %v2282_v14, %s2192_s12  ;;  %v2291_v17 = vmul.f32 0.35355338, %v2282_v14 }
  0xe0   :  { %213 = vrot.lane.b32.xlu0 %v2285_v15, %s2192_s12 }
 0x14e   :  { %v135_v16 = vpop.permute.xlu0 %134 }
 0x14f   :  { %1964 = vmatpush3.xpose.msk.msra.mxu1 %vm136_vm2, %v135_v16 }
 0x150   :  { %1968 = vmatprep.subr.mxu1 %v2190_v6 }
 0x152   :  { %v214_v18 = vpop.permute.xlu0 %213  ;;  %1966 = vmatmul.mubr.msk.f32.vlgmr.msra.gmra.mxu1 %vm136_vm2, %v2291_v17 }
 0x153   :  { %1969 = vmatpush3.xpose.msk.msra.mxu1 %vm136_vm2, %v214_v18  ;;  %1970 = vmatprep.mubr.msk.f32.mxu1 %vm2191_vm1, %v2190_v6 }
 0x154   :  { %1978 = vmatprep.subr.mxu1 %v2190_v6 }
 0x156   :  { %1971 = vmatmul.mubr.msk.f32.vlgmr.msra.gmra.mxu1 %vm136_vm2, %v2299_v19 }
 0x157   :  { %1980 = vmatprep.mubr.msk.f32.mxu1 %vm2191_vm1, %v2190_v6 }
 0x212   :  { %v208_v20 = vpop.f32.mrf.mxu1 }
 0x213   :  { %v290_v21 = vsel %vm136_vm2, %v208_v20, -inf }
 0x214   :  { %291 = vmax.xlane.f32.xlu1 %v290_v21  ;;  %v1967_v22 = vpop.f32.mrf.mxu1 }
 0x216   :  { %v286_v23 = vpop.f32.mrf.mxu1 }
 0x217   :  { %v293_v24 = vsel %vm136_vm2, %v286_v23, -inf }
 0x218   :  { %294 = vmax.xlane.f32.xlu1 %v293_v24  ;;  %v1972_v25 = vpop.f32.mrf.mxu1 }
 0x229   :  { %312 = vrot.lane.b32.xlu1 %v2282_v14, %s2193_s5 }
 0x22d   :  { %388 = vrot.lane.b32.xlu1 %v2285_v15, %s2193_s5 }
 0x231   :  { %466 = vrot.lane.b32.xlu1 %v2282_v14, %s2194_s13 }
 0x235   :  { %544 = vrot.lane.b32.xlu1 %v2285_v15, %s2194_s13 }
 0x29d   :  { %v292_v26 = vpop.xlane.xlu1 %291 }
 0x29e   :  { %v296_v27 = vsub.f32 %v208_v20, %v292_v26 }
 0x2a0   :  { %v298_v28 = vmul.f32 1.442695, %v296_v27 }
 0x2a1   :  { %v295_v29 = vpop.xlane.xlu1 %294 }
 0x2a2   :  { %2103 = vpow2.f32 %v298_v28  ;;  %v297_v30 = vsub.f32 %v286_v23, %v295_v29 }
 0x2a4   :  { %v300_v31 = vmul.f32 1.442695, %v297_v30 }
 0x2a5   :  { %v313_v32 = vpop.permute.xlu1 %312 }
 0x2a6   :  { %2105 = vpow2.f32 %v300_v31  ;;  %1974 = vmatpush3.msra.mxu0 %v313_v32 }
 0x2a7   :  { %1983 = vmatprep.subr.mxu0 %v2190_v6 }
 0x2a9   :  { %v389_v33 = vpop.permute.xlu1 %388 }
 0x2aa   :  { %1979 = vmatpush3.msra.mxu1 %v389_v33 }
 0x2ab   :  { %1988 = vmatprep.subr.mxu1 %v2190_v6 }
 0x2ad   :  { %v467_v38 = vpop.permute.xlu1 %466 }
 0x2af   :  { %v2104_v34 = vpop.eup %2103 }
 0x2b0   :  { %v302_v35 = vsel %vm136_vm2, %v2104_v34, 0.0 }
 0x2b1   :  { %303 = vadd.xlane.f32.xlu0 %v302_v35  ;;  %v545_v39 = vpop.permute.xlu1 %544 }
 0x2b3   :  { %v2106_v36 = vpop.eup %2105 }
 0x2b4   :  { %v305_v37 = vsel %vm136_vm2, %v2106_v36, 0.0 }
 0x2b5   :  { %306 = vadd.xlane.f32.xlu1 %v305_v37 }
 0x2c6   :  { %542 = vrot.lane.b32.xlu1 %v2299_v19, %s2195_s14 }
 0x2c7   :  { %464 = vrot.lane.b32.xlu0 %v2291_v17, %s2195_s14 }
 0x33a   :  { %v304_v40 = vpop.xlane.xlu0 %303 }
 0x33b   :  { %2107 = vrcp.f32 %v304_v40 }
 0x33e   :  { %v307_v41 = vpop.xlane.xlu1 %306  ;;  %v465_v46 = vpop.permute.xlu0 %464 }
 0x33f   :  { %2109 = vrcp.f32 %v307_v41 }
 0x342   :  { %v543_v47 = vpop.permute.xlu1 %542 }
 0x348   :  { %v2108_v42 = vpop.eup %2107 }
 0x349   :  { %v309_v43 = vmul.f32 %v2108_v42, %v2104_v34 }
 0x34b   :  { %1976 = vmatmul.mubr.msk.f32.vlgmr.msra.gmra.mxu0 %vm136_vm2, %v309_v43 }
 0x34c   :  { %v2110_v44 = vpop.eup %2109  ;;  %1984 = vmatpush3.xpose.msk.msra.mxu0 %vm136_vm2, %v467_v38  ;;  %1985 = vmatprep.mubr.msk.f32.mxu0 %vm2191_vm1, %v2190_v6 }
 0x34d   :  { %v311_v45 = vmul.f32 %v2110_v44, %v2106_v36  ;;  %1993 = vmatprep.subr.mxu0 %v2190_v6 }
 0x34f   :  { %1981 = vmatmul.mubr.msk.f32.vlgmr.msra.gmra.mxu1 %vm136_vm2, %v311_v45  ;;  %1986 = vmatmul.mubr.msk.f32.vlgmr.msra.gmra.mxu0 %vm136_vm2, %v465_v46 }
 0x350   :  { %1989 = vmatpush3.xpose.msk.msra.mxu1 %vm136_vm2, %v545_v39  ;;  %1990 = vmatprep.mubr.msk.f32.mxu1 %vm2191_vm1, %v2190_v6 }
 0x351   :  { %1998 = vmatprep.subr.mxu1 %v2190_v6  ;;  %1995 = vmatprep.mubr.msk.f32.mxu0 %vm2191_vm1, %v2190_v6 }
 0x353   :  { %1991 = vmatmul.mubr.msk.f32.vlgmr.msra.gmra.mxu1 %vm136_vm2, %v543_v47 }
 0x354   :  { %2000 = vmatprep.mubr.msk.f32.mxu1 %vm2191_vm1, %v2190_v6 }
 0x40b   :  { %v2334_v48 = vpop.f32.mrf.mxu0 }
 0x40d   :  { %v1977_v49 = vpop.f32.mrf.mxu0 }
 0x40f   :  { %v2336_v50 = vpop.f32.mrf.mxu1  ;;  %v538_v51 = vpop.f32.mrf.mxu0 }
 0x410   :  { %v620_v52 = vsel %vm136_vm2, %v538_v51, -inf }
 0x411   :  { %621 = vmax.xlane.f32.xlu1 %v620_v52  ;;  %v1982_v53 = vpop.f32.mrf.mxu1  ;;  %v1987_v54 = vpop.f32.mrf.mxu0 }
 0x413   :  { %v616_v55 = vpop.f32.mrf.mxu1 }
 0x414   :  { %v623_v56 = vsel %vm136_vm2, %v616_v55, -inf }
 0x415   :  { %624 = vmax.xlane.f32.xlu0 %v623_v56  ;;  %v1992_v57 = vpop.f32.mrf.mxu1 }
 0x422   :  { %642 = vrot.lane.b32.xlu1 %v2282_v14, %s2196_s15 }
 0x426   :  { %796 = vrot.lane.b32.xlu1 %v2282_v14, %s2197_s16 }
 0x42a   :  { %874 = vrot.lane.b32.xlu1 %v2285_v15, %s2197_s16 }
 0x42b   :  { %718 = vrot.lane.b32.xlu0 %v2285_v15, %s2196_s15 }
 0x42f   :  { %794 = vrot.lane.b32.xlu0 %v2291_v17, %s2198_s17 }
 0x49a   :  { %v622_v58 = vpop.xlane.xlu1 %621 }
 0x49b   :  { %v626_v59 = vsub.f32 %v538_v51, %v622_v58 }
 0x49d   :  { %v628_v60 = vmul.f32 1.442695, %v626_v59 }
 0x49e   :  { %v643_v61 = vpop.permute.xlu1 %642  ;;  %v625_v62 = vpop.xlane.xlu0 %624 }
 0x49f   :  { %2111 = vpow2.f32 %v628_v60  ;;  %v627_v63 = vsub.f32 %v616_v55, %v625_v62  ;;  %1994 = vmatpush3.msra.mxu0 %v643_v61 }
 0x4a0   :  { %2003 = vmatprep.subr.mxu0 %v2190_v6 }
 0x4a1   :  { %v630_v0 = vmul.f32 1.442695, %v627_v63 }
 0x4a2   :  { %v719_v1 = vpop.permute.xlu0 %718  ;;  %v797_v11 = vpop.permute.xlu1 %796 }
 0x4a3   :  { %2113 = vpow2.f32 %v630_v0  ;;  %1999 = vmatpush3.msra.mxu1 %v719_v1 }
 0x4a4   :  { %2008 = vmatprep.subr.mxu1 %v2190_v6 }
 0x4a6   :  { %v875_v12 = vpop.permute.xlu1 %874  ;;  %v795_v23 = vpop.permute.xlu0 %794 }
 0x4ac   :  { %v2112_v3 = vpop.eup %2111 }
 0x4ad   :  { %v632_v4 = vsel %vm136_vm2, %v2112_v3, 0.0 }
 0x4ae   :  { %633 = vadd.xlane.f32.xlu1 %v632_v4 }
 0x4b0   :  { %v2114_v7 = vpop.eup %2113 }
 0x4b1   :  { %v635_v9 = vsel %vm136_vm2, %v2114_v7, 0.0 }
 0x4b2   :  { %636 = vadd.xlane.f32.xlu1 %v635_v9 }
 0x4c3   :  { %872 = vrot.lane.b32.xlu1 %v2299_v19, %s2198_s17 }
 0x537   :  { %v634_v13 = vpop.xlane.xlu1 %633 }
 0x538   :  { %2115 = vrcp.f32 %v634_v13 }
 0x53b   :  { %v637_v16 = vpop.xlane.xlu1 %636 }
 0x53c   :  { %2117 = vrcp.f32 %v637_v16 }
 0x53f   :  { %v873_v24 = vpop.permute.xlu1 %872 }
 0x545   :  { %v2116_v18 = vpop.eup %2115 }
 0x546   :  { %v639_v20 = vmul.f32 %v2116_v18, %v2112_v3 }
 0x548   :  { %1996 = vmatmul.mubr.msk.f32.vlgmr.msra.gmra.mxu0 %vm136_vm2, %v639_v20 }
 0x549   :  { %v2118_v21 = vpop.eup %2117  ;;  %2004 = vmatpush3.xpose.msk.msra.mxu0 %vm136_vm2, %v797_v11  ;;  %2005 = vmatprep.mubr.msk.f32.mxu0 %vm2191_vm1, %v2190_v6 }
 0x54a   :  { %v641_v22 = vmul.f32 %v2118_v21, %v2114_v7  ;;  %2013 = vmatprep.subr.mxu0 %v2190_v6 }
 0x54c   :  { %2001 = vmatmul.mubr.msk.f32.vlgmr.msra.gmra.mxu1 %vm136_vm2, %v641_v22  ;;  %2006 = vmatmul.mubr.msk.f32.vlgmr.msra.gmra.mxu0 %vm136_vm2, %v795_v23 }
 0x54d   :  { %2009 = vmatpush3.xpose.msk.msra.mxu1 %vm136_vm2, %v875_v12  ;;  %2010 = vmatprep.mubr.msk.f32.mxu1 %vm2191_vm1, %v2190_v6 }
 0x54e   :  { %2018 = vmatprep.subr.mxu1 %v2190_v6  ;;  %2015 = vmatprep.mubr.msk.f32.mxu0 %vm2191_vm1, %v2190_v6 }
 0x550   :  { %2011 = vmatmul.mubr.msk.f32.vlgmr.msra.gmra.mxu1 %vm136_vm2, %v873_v24 }
 0x551   :  { %2020 = vmatprep.mubr.msk.f32.mxu1 %vm2191_vm1, %v2190_v6 }
 0x608   :  { %v2366_v25 = vpop.f32.mrf.mxu0 }
 0x60a   :  { %v1997_v26 = vpop.f32.mrf.mxu0 }
 0x60c   :  { %v2368_v27 = vpop.f32.mrf.mxu1  ;;  %v868_v28 = vpop.f32.mrf.mxu0 }
 0x60d   :  { %v950_v29 = vsel %vm136_vm2, %v868_v28, -inf }
 0x60e   :  { %951 = vmax.xlane.f32.xlu0 %v950_v29  ;;  %v2002_v30 = vpop.f32.mrf.mxu1  ;;  %v2007_v31 = vpop.f32.mrf.mxu0  ;;  %v1487_v29 = vld [vmem:[%s2500_s2 + $0x8] sm:$0xff] }
 0x60f   :  { %v1486_v30 = vld [vmem:[%s2500_s2] sm:$0xff] }
 0x610   :  { %v946_v32 = vpop.f32.mrf.mxu1 }
 0x611   :  { %v953_v33 = vsel %vm136_vm2, %v946_v32, -inf }
 0x612   :  { %954 = vmax.xlane.f32.xlu1 %v953_v33  ;;  %v2012_v34 = vpop.f32.mrf.mxu1 }
 0x623   :  { %972 = vrot.lane.b32.xlu1 %v2282_v14, %s2199_s18 }
 0x624   :  { %1048 = vrot.lane.b32.xlu0 %v2285_v15, %s2199_s18 }
 0x627   :  { %1126 = vrot.lane.b32.xlu1 %v2282_v14, %s2200_s19 }
 0x62b   :  { %1204 = vrot.lane.b32.xlu1 %v2285_v15, %s2200_s19 }
 0x62f   :  { %1202 = vrot.lane.b32.xlu1 %v2299_v19, %s2201_s20 }
 0x697   :  { %v952_v35 = vpop.xlane.xlu0 %951 }
 0x698   :  { %v956_v36 = vsub.f32 %v868_v28, %v952_v35  ;;  %v1489_v28 = vld [vmem:[%s2500_s2 + $0x18] sm:$0xff] }
 0x69a   :  { %v958_v37 = vmul.f32 1.442695, %v956_v36 }
 0x69b   :  { %v1049_v38 = vpop.permute.xlu0 %1048  ;;  %v955_v39 = vpop.xlane.xlu1 %954 }
 0x69c   :  { %2119 = vpow2.f32 %v958_v37  ;;  %v957_v40 = vsub.f32 %v946_v32, %v955_v39  ;;  %2019 = vmatpush3.msra.mxu1 %v1049_v38 }
 0x69d   :  { %2028 = vmatprep.subr.mxu1 %v2190_v6 }
 0x69e   :  { %v960_v41 = vmul.f32 1.442695, %v957_v40 }
 0x69f   :  { %v973_v42 = vpop.permute.xlu1 %972 }
 0x6a0   :  { %2121 = vpow2.f32 %v960_v41  ;;  %2014 = vmatpush3.msra.mxu0 %v973_v42 }
 0x6a1   :  { %2023 = vmatprep.subr.mxu0 %v2190_v6 }
 0x6a3   :  { %v1127_v49 = vpop.permute.xlu1 %1126 }
 0x6a7   :  { %v1205_v54 = vpop.permute.xlu1 %1204 }
 0x6a9   :  { %v2120_v43 = vpop.eup %2119 }
 0x6aa   :  { %v962_v44 = vsel %vm136_vm2, %v2120_v43, 0.0 }
 0x6ab   :  { %963 = vadd.xlane.f32.xlu0 %v962_v44  ;;  %v1203_v56 = vpop.permute.xlu1 %1202 }
 0x6ad   :  { %v2122_v19 = vpop.eup %2121 }
 0x6ae   :  { %v965_v45 = vsel %vm136_vm2, %v2122_v19, 0.0 }
 0x6af   :  { %966 = vadd.xlane.f32.xlu0 %v965_v45 }
 0x6c5   :  { %1124 = vrot.lane.b32.xlu0 %v2291_v17, %s2201_s20 }
 0x734   :  { %v964_v46 = vpop.xlane.xlu0 %963 }
 0x735   :  { %2123 = vrcp.f32 %v964_v46  ;;  %v1492_v46 = vsub.s32 1, %v2269_v8 }
 0x738   :  { %v967_v47 = vpop.xlane.xlu0 %966 }
 0x739   :  { %2125 = vrcp.f32 %v967_v47  ;;  %v1493_v47 = vrot.slane %v2279_v10, %v1492_v46 }
 0x73c   :  { %v1125_v17 = vpop.permute.xlu0 %1124 }
 0x742   :  { %v2124_v51 = vpop.eup %2123 }
 0x743   :  { %v969_v52 = vmul.f32 %v2124_v51, %v2120_v43 }
 0x745   :  { %2016 = vmatmul.mubr.msk.f32.vlgmr.msra.gmra.mxu0 %vm136_vm2, %v969_v52 }
 0x746   :  { %v2126_v53 = vpop.eup %2125  ;;  %2024 = vmatpush3.xpose.msk.msra.mxu0 %vm136_vm2, %v1127_v49  ;;  %2025 = vmatprep.mubr.msk.f32.mxu0 %vm2191_vm1, %v2190_v6 }
 0x747   :  { %v971_v55 = vmul.f32 %v2126_v53, %v2122_v19  ;;  %2033 = vmatprep.subr.mxu0 %v2190_v6 }
 0x749   :  { %2021 = vmatmul.mubr.msk.f32.vlgmr.msra.gmra.mxu1 %vm136_vm2, %v971_v55  ;;  %2026 = vmatmul.mubr.msk.f32.vlgmr.msra.gmra.mxu0 %vm136_vm2, %v1125_v17 }
 0x74a   :  { %2029 = vmatpush3.xpose.msk.msra.mxu1 %vm136_vm2, %v1205_v54  ;;  %2030 = vmatprep.mubr.msk.f32.mxu1 %vm2191_vm1, %v2190_v6 }
 0x74b   :  { %2038 = vmatprep.subr.mxu1 %v2190_v6  ;;  %2035 = vmatprep.mubr.msk.f32.mxu0 %vm2191_vm1, %v2190_v6 }
 0x74d   :  { %2031 = vmatmul.mubr.msk.f32.vlgmr.msra.gmra.mxu1 %vm136_vm2, %v1203_v56 }
 0x74e   :  { %2040 = vmatprep.mubr.msk.f32.mxu1 %vm2191_vm1, %v2190_v6 }
 0x805   :  { %v1044_v57 = vpop.f32.mrf.mxu0 }
 0x807   :  { %v2017_v58 = vpop.f32.mrf.mxu0 }
 0x809   :  { %v1120_v59 = vpop.f32.mrf.mxu1  ;;  %v1198_v60 = vpop.f32.mrf.mxu0 }
 0x80a   :  { %v1280_v61 = vsel %vm136_vm2, %v1198_v60, -inf }
 0x80b   :  { %1281 = vmax.xlane.f32.xlu0 %v1280_v61  ;;  %v2022_v62 = vpop.f32.mrf.mxu1  ;;  %v2027_v63 = vpop.f32.mrf.mxu0 }
 0x80d   :  { %v1276_v0 = vpop.f32.mrf.mxu1 }
 0x80e   :  { %v1283_v1 = vsel %vm136_vm2, %v1276_v0, -inf }
 0x80f   :  { %1284 = vmax.xlane.f32.xlu1 %v1283_v1  ;;  %v2032_v3 = vpop.f32.mrf.mxu1  ;;  %v1617_v1 = vld [vmem:[%s2501_s3 + $0x8] sm:$0xff] }
 0x810   :  { %v1616_v3 = vld [vmem:[%s2501_s3] sm:$0xff] }
 0x820   :  { %1302 = vrot.lane.b32.xlu1 %v2282_v14, %s2202_s21 }
 0x824   :  { %1456 = vrot.lane.b32.xlu1 %v2366_v25, %s2189_s25 }
 0x828   :  { %1458 = vrot.lane.b32.xlu1 %v2368_v27, %s2189_s25 }
 0x82c   :  { %1466 = vrot.lane.b32.xlu1 %v1120_v59, %s2203_s22 }
 0x894   :  { %v1282_v6 = vpop.xlane.xlu0 %1281 }
 0x895   :  { %v1286_v4 = vsub.f32 %v1198_v60, %v1282_v6  ;;  %v1714_v6 = vld [vmem:[%s2502_s4 + $0x38] sm:$0xff] }
 0x897   :  { %v1288_v7 = vmul.f32 1.442695, %v1286_v4  ;;  %v1713_v4 = vld [vmem:[%s2502_s4 + $0x30] sm:$0xff] }
 0x898   :  { %v1285_v9 = vpop.xlane.xlu1 %1284 }
 0x899   :  { %2127 = vpow2.f32 %v1288_v7  ;;  %v1287_v11 = vsub.f32 %v1276_v0, %v1285_v9  ;;  %v1618_v0 = vld [vmem:[%s2501_s3 + $0x10] sm:$0xff]  ;;  %v1712_v7 = vld [vmem:[%s2502_s4 + $0x28] sm:$0xff]  ;;  %v1711_v9 = vld [vmem:[%s2502_s4 + $0x20] sm:$0xff] }
 0x89b   :  { %v1290_v12 = vmul.f32 1.442695, %v1287_v11 }
 0x89c   :  { %v1303_v13 = vpop.permute.xlu1 %1302 }
 0x89d   :  { %2129 = vpow2.f32 %v1290_v12  ;;  %2034 = vmatpush3.msra.mxu0 %v1303_v13 }
 0x89e   :  { %2043 = vmatprep.subr.mxu0 %v1489_v28 }
 0x8a0   :  { %v1457_v35 = vpop.permute.xlu1 %1456 }
 0x8a1   :  { %v1478_v38 = vsel %vm136_vm2, %v2334_v48, %v1457_v35  ;;  %v1622_v35 = vsub.s32 4, %v2269_v8 }
 0x8a4   :  { %v1459_v36 = vpop.permute.xlu1 %1458 }
 0x8a5   :  { %v1479_v43 = vsel %vm136_vm2, %v2336_v50, %v1459_v36  ;;  %v1623_v36 = vrot.slane %v2279_v10, %v1622_v35 }
 0x8a6   :  { %v2128_v16 = vpop.eup %2127 }
 0x8a7   :  { %v1292_v14 = vsel %vm136_vm2, %v2128_v16, 0.0 }
 0x8a8   :  { %1293 = vadd.xlane.f32.xlu0 %v1292_v14  ;;  %v1467_v39 = vpop.permute.xlu1 %1466 }
 0x8a9   :  { %v1482_v44 = vsel %vm1480_vm4, %v1479_v43, %v1467_v39  ;;  %v1717_v43 = vsub.s32 5, %v2269_v8 }
 0x8aa   :  { %v2130_v18 = vpop.eup %2129 }
 0x8ab   :  { %v1295_v20 = vsel %vm136_vm2, %v2130_v18, 0.0 }
 0x8ac   :  { %1296 = vadd.xlane.f32.xlu0 %v1295_v20  ;;  %v1606_v20 = vsub.s32 2, %v2269_v8 }
 0x8c2   :  { %1378 = vrot.lane.b32.xlu0 %v2285_v15, %s2202_s21  ;;  %v1488_v15 = vld [vmem:[%s2500_s2 + $0x10] sm:$0xff] }
 0x8c6   :  { %1464 = vrot.lane.b32.xlu0 %v1044_v57, %s2203_s22 }
 0x931   :  { %v1294_v21 = vpop.xlane.xlu0 %1293 }
 0x932   :  { %2131 = vrcp.f32 %v1294_v21  ;;  %v1612_v21 = vsub.s32 3, %v2269_v8 }
 0x935   :  { %v1297_v22 = vpop.xlane.xlu0 %1296 }
 0x936   :  { %2133 = vrcp.f32 %v1297_v22  ;;  %v1607_v22 = vrot.slane %v2279_v10, %v1606_v20 }
 0x939   :  { %v1379_v23 = vpop.permute.xlu0 %1378 }
 0x93a   :  { %2039 = vmatpush3.msra.mxu1 %v1379_v23 }
 0x93d   :  { %v1465_v37 = vpop.permute.xlu0 %1464 }
 0x93e   :  { %v1481_v40 = vsel %vm1480_vm4, %v1478_v38, %v1465_v37 }
 0x93f   :  { %v2132_v24 = vpop.eup %2131 }
 0x940   :  { %v1299_v25 = vmul.f32 %v2132_v24, %v2128_v16 }
 0x942   :  { %2036 = vmatmul.mubr.msk.f32.vlgmr.msra.gmra.mxu0 %vm136_vm2, %v1299_v25  ;;  %v1613_v25 = vrot.slane %v2279_v10, %v1612_v21 }
 0x943   :  { %v2134_v26 = vpop.eup %2133  ;;  %2044 = vmatpush3.msra.mxu0 %v1489_v28 }
 0x944   :  { %v1301_v27 = vmul.f32 %v2134_v26, %v2130_v18  ;;  %2045 = vmatprep.subr.mxu0 %v1488_v15 }
 0x945   :  { %2046 = vmatpush3.msra.mxu0 %v1488_v15 }
 0x946   :  { %2041 = vmatmul.mubr.msk.f32.vlgmr.msra.gmra.mxu1 %vm136_vm2, %v1301_v27  ;;  %2047 = vmatprep.subr.mxu0 %v1487_v29 }
 0x947   :  { %2048 = vmatpush3.msra.mxu0 %v1487_v29 }
 0x948   :  { %2049 = vmatprep.subr.mxu0 %v1486_v30 }
 0x949   :  { %2050 = vmatpush3.msra.mxu0 %v1486_v30 }
 0x94a   :  { %2065 = vmatprep.subr.mxu0 %v1714_v6 }
 0xa02   :  { %v1374_v31 = vpop.f32.mrf.mxu0 }
 0xa03   :  { %1472 = vrot.lane.b32.xlu0 %v1374_v31, %s2204_s9  ;;  %v1710_v31 = vld [vmem:[%s2502_s4 + $0x18] sm:$0xff] }
 0xa04   :  { %v2037_v32 = vpop.f32.mrf.mxu0 }
 0xa05   :  { %v1709_v32 = vld [vmem:[%s2502_s4 + $0x10] sm:$0xff] }
 0xa06   :  { %v1450_v33 = vpop.f32.mrf.mxu1 }
 0xa07   :  { %1474 = vrot.lane.b32.xlu1 %v1450_v33, %s2204_s9  ;;  %v1708_v33 = vld [vmem:[%s2502_s4 + $0x8] sm:$0xff] }
 0xa08   :  { %v2042_v34 = vpop.f32.mrf.mxu1 }
 0xa09   :  { %v1707_v34 = vld [vmem:[%s2502_s4] sm:$0xff]  ;;  %s2205_s4 = smov [#allocation5]  }
 0xa0a   :  { %s1848_s7 = sshll.u32 %s2205_s4, 4  ;;  %s1849_s7 = int_to_ptr.vmem [resolvable:$true] %s1848_s7 }
 0xa0b   :  { %s2163_s8 = scalar_lea.vmem %s1849_s7, 256  ;;  %p2168_p6 = scmp.lt.s32.totalorder %s1849_s7, %s1849_s7 }
 0xa0c   :  { %p2164_p5 = scmp.ne.s32.totalorder %s1849_s7, %s2163_s8  ;;  %p2169_p7 = scmp.lt.s32.totalorder %s2163_s8, %s2163_s8 }
 0xa0e   :  { %p2170_p8 = por %p2169_p7, %p2168_p6 }
 0xa10   :  { %p2171_p9 = pnand %p2170_p8, %p2164_p5 }
 0xa75   :  { %v1473_v41 = vpop.permute.xlu0 %1472 }
 0xa76   :  { %v1484_v42 = vsel %vm1483_vm3, %v1481_v40, %v1473_v41 }
 0xa77   :  { %2051 = vmatprep.mubr.msk.f32.mxu0 %vm49_vm0, %v1484_v42 }
 0xa79   :  { %v1475_v19 = vpop.permute.xlu1 %1474 }
 0xa7a   :  { %v1485_v45 = vsel %vm1483_vm3, %v1482_v44, %v1475_v19  ;;  %v1718_v44 = vrot.slane %v2279_v10, %v1717_v43 }
 0xa7b   :  { %2052 = vmatmul.mubr.msk.f32.vlgmr.msra.gmra.mxu0 %vm49_vm0, %v1485_v45 }
 0xa7c   :  { %2066 = vmatpush3.msra.mxu0 %v1714_v6 }
 0xa7d   :  { %2067 = vmatprep.subr.mxu0 %v1713_v4 }
 0xa7e   :  { %2068 = vmatpush3.msra.mxu0 %v1713_v4 }
 0xa7f   :  { %2069 = vmatprep.subr.mxu0 %v1712_v7 }
 0xa80   :  { %2070 = vmatpush3.msra.mxu0 %v1712_v7 }
 0xa81   :  { %2071 = vmatprep.subr.mxu0 %v1711_v9 }
 0xa82   :  { %2072 = vmatpush3.msra.mxu0 %v1711_v9 }
 0xa83   :  { %2073 = vmatprep.subr.mxu0 %v1710_v31 }
 0xa84   :  { %2074 = vmatpush3.msra.mxu0 %v1710_v31 }
 0xa85   :  { %2075 = vmatprep.subr.mxu0 %v1709_v32 }
 0xa86   :  { %2076 = vmatpush3.msra.mxu0 %v1709_v32 }
 0xa87   :  { %2077 = vmatprep.subr.mxu0 %v1708_v33 }
 0xa88   :  { %2078 = vmatpush3.msra.mxu0 %v1708_v33 }
 0xa89   :  { %2079 = vmatprep.subr.mxu0 %v1707_v34 }
 0xa8a   :  { %2080 = vmatpush3.msra.mxu0 %v1707_v34 }
 0xb3b   :  { %v2053_v48 = vpop.f32.mrf.mxu0 }
 0xb3c   :  { %v1572_v49 = vadd.f32 %v2053_v48, %v1493_v47 }
 0xb3d   :  { %v1566_v51 = vpop.f32.mrf.mxu0 }
 0xb3e   :  { %v1567_v52 = vadd.f32 %v1566_v51, %v1493_v47  ;;  %v1576_v53 = vadd.f32 %v1572_v49, %v2263_v5 }
 0xb40   :  { %v1580_v54 = vsel %vm49_vm0, %v1576_v53, 0.0  ;;  %v1575_v55 = vadd.f32 %v1567_v52, %v2253_v2  ;;  %v1619_v2 = vld [vmem:[%s2501_s3 + $0x18] sm:$0xff] }
 0xb41   :  { %1581 = vadd.xlane.f32.xlu1 %v1580_v54  ;;  %2054 = vmatprep.subr.mxu1 %v1619_v2 }
 0xb42   :  { %v1577_v50 = vsel %vm49_vm0, %v1575_v55, 0.0  ;;  %2055 = vmatpush3.msra.mxu1 %v1619_v2 }
 0xb43   :  { %1578 = vadd.xlane.f32.xlu0 %v1577_v50  ;;  %2056 = vmatprep.subr.mxu1 %v1618_v0 }
 0xb44   :  { %2057 = vmatpush3.msra.mxu1 %v1618_v0 }
 0xb45   :  { %2058 = vmatprep.subr.mxu1 %v1617_v1 }
 0xb46   :  { %2059 = vmatpush3.msra.mxu1 %v1617_v1  ;;  %v1831_v1 = vsub.s32 6, %v2269_v8 }
 0xb47   :  { %2060 = vmatprep.subr.mxu1 %v1616_v3 }
 0xb48   :  { %2061 = vmatpush3.msra.mxu1 %v1616_v3  ;;  %v1837_v3 = vsub.s32 7, %v2269_v8  ;;  %v1832_v6 = vrot.slane %v2279_v10, %v1831_v1 }
 0xb4a   :  { %v1838_v9 = vrot.slane %v2279_v10, %v1837_v3 }
 0xbca   :  { %v1582_v17 = vpop.xlane.xlu1 %1581 }
 0xbcb   :  { %v1585_v56 = vmul.f32 0.03125, %v1582_v17 }
 0xbcc   :  { %v1579_v57 = vpop.xlane.xlu0 %1578 }
 0xbcd   :  { %v1584_v58 = vmul.f32 0.03125, %v1579_v57  ;;  %v1587_v59 = vsub.f32 %v1576_v53, %v1585_v56 }
 0xbcf   :  { %v1586_v60 = vsub.f32 %v1575_v55, %v1584_v58  ;;  %v1589_v63 = vmul.f32 %v1587_v59, %v1587_v59 }
 0xbd1   :  { %v1588_v61 = vmul.f32 %v1586_v60, %v1586_v60  ;;  %v1593_v5 = vsel %vm49_vm0, %v1589_v63, 0.0 }
 0xbd3   :  { %v1590_v62 = vsel %vm49_vm0, %v1588_v61, 0.0 }
 0xbd4   :  { %1591 = vadd.xlane.f32.xlu0 %v1590_v62 }
 0xbd8   :  { %1594 = vadd.xlane.f32.xlu0 %v1593_v5 }
 0xc5d   :  { %v1592_v11 = vpop.xlane.xlu0 %1591 }
 0xc5e   :  { %v1596_v12 = vmul.f32 0.03125, %v1592_v11 }
 0xc60   :  { %v1598_v13 = vadd.f32 1e-05, %v1596_v12 }
 0xc61   :  { %v1595_v16 = vpop.xlane.xlu0 %1594 }
 0xc62   :  { %2135 = vrsqrt.f32 %v1598_v13  ;;  %v1597_v14 = vmul.f32 0.03125, %v1595_v16 }
 0xc64   :  { %v1599_v18 = vadd.f32 1e-05, %v1597_v14 }
 0xc66   :  { %2137 = vrsqrt.f32 %v1599_v18 }
 0xc6f   :  { %v2136_v23 = vpop.eup %2135 }
 0xc70   :  { %v1602_v24 = vmul.f32 %v2136_v23, %v1586_v60 }
 0xc72   :  { %v1608_v26 = vmul.f32 %v1607_v22, %v1602_v24 }
 0xc73   :  { %v2138_v27 = vpop.eup %2137 }
 0xc74   :  { %v1603_v28 = vmul.f32 %v2138_v27, %v1587_v59  ;;  %v1614_v15 = vadd.f32 %v1613_v25, %v1608_v26 }
 0xc76   :  { %v1609_v29 = vmul.f32 %v1607_v22, %v1603_v28  ;;  %2062 = vmatprep.mubr.msk.f32.mxu1 %vm49_vm0, %v1614_v15 }
 0xc78   :  { %v1615_v30 = vadd.f32 %v1613_v25, %v1609_v29 }
 0xc7a   :  { %2063 = vmatmul.mubr.msk.f32.vlgmr.msra.gmra.mxu1 %vm49_vm0, %v1615_v30 }
 0xd3a   :  { %v2064_v37 = vpop.f32.mrf.mxu1 }
 0xd3b   :  { %v1702_v38 = vadd.f32 %v2064_v37, %v1623_v36 }
 0xd3c   :  { %v1696_v39 = vpop.f32.mrf.mxu1 }
 0xd3d   :  { %v1697_v40 = vadd.f32 %v1696_v39, %v1623_v36  ;;  %v1706_v42 = vmax.f32 %v1702_v38, 0.0 }
 0xd3f   :  { %v1705_v41 = vmax.f32 %v1697_v40, 0.0 }
 0xd41   :  { %2081 = vmatprep.mubr.msk.f32.mxu0 %vm1719_vm5, %v1705_v41 }
 0xd42   :  { %2082 = vmatmul.mubr.msk.f32.vlgmr.msra.gmra.mxu0 %vm1719_vm5, %v1706_v42 }
 0xe02   :  { %v2083_v19 = vpop.f32.mrf.mxu0 }
 0xe03   :  { %v1798_v45 = vadd.f32 %v2083_v19, %v1718_v44 }
 0xe04   :  { %v1792_v46 = vpop.f32.mrf.mxu0 }
 0xe05   :  { %v1793_v47 = vadd.f32 %v1792_v46, %v1718_v44  ;;  %v1802_v48 = vadd.f32 %v1798_v45, %v1615_v30 }
 0xe07   :  { %v1806_v49 = vsel %vm49_vm0, %v1802_v48, 0.0  ;;  %v1801_v51 = vadd.f32 %v1793_v47, %v1614_v15 }
 0xe08   :  { %1807 = vadd.xlane.f32.xlu0 %v1806_v49 }
 0xe09   :  { %v1803_v52 = vsel %vm49_vm0, %v1801_v51, 0.0 }
 0xe0a   :  { %1804 = vadd.xlane.f32.xlu1 %v1803_v52 }
 0xe91   :  { %v1808_v53 = vpop.xlane.xlu0 %1807 }
 0xe92   :  { %v1810_v54 = vmul.f32 0.03125, %v1808_v53 }
 0xe93   :  { %v1805_v55 = vpop.xlane.xlu1 %1804 }
 0xe94   :  { %v1812_v50 = vsub.f32 %v1802_v48, %v1810_v54  ;;  %v1809_v17 = vmul.f32 0.03125, %v1805_v55 }
 0xe96   :  { %v1811_v56 = vsub.f32 %v1801_v51, %v1809_v17  ;;  %v1814_v57 = vmul.f32 %v1812_v50, %v1812_v50 }
 0xe98   :  { %v1818_v58 = vsel %vm49_vm0, %v1814_v57, 0.0  ;;  %v1813_v59 = vmul.f32 %v1811_v56, %v1811_v56 }
 0xe99   :  { %1819 = vadd.xlane.f32.xlu0 %v1818_v58 }
 0xe9a   :  { %v1815_v60 = vsel %vm49_vm0, %v1813_v59, 0.0 }
 0xe9b   :  { %1816 = vadd.xlane.f32.xlu1 %v1815_v60 }
 0xf22   :  { %v1820_v61 = vpop.xlane.xlu0 %1819 }
 0xf23   :  { %v1822_v62 = vmul.f32 0.03125, %v1820_v61 }
 0xf24   :  { %v1817_v63 = vpop.xlane.xlu1 %1816 }
 0xf25   :  { %v1824_v5 = vadd.f32 1e-05, %v1822_v62  ;;  %v1821_v2 = vmul.f32 0.03125, %v1817_v63 }
 0xf27   :  { %2139 = vrsqrt.f32 %v1824_v5  ;;  %v1823_v0 = vadd.f32 1e-05, %v1821_v2 }
 0xf29   :  { %2141 = vrsqrt.f32 %v1823_v0 }
 0xf34   :  { %v2140_v4 = vpop.eup %2139 }
 0xf35   :  { %v1828_v7 = vmul.f32 %v2140_v4, %v1812_v50 }
 0xf36   :  { %v2142_v11 = vpop.eup %2141 }
 0xf37   :  { %v1827_v12 = vmul.f32 %v2142_v11, %v1811_v56  ;;  %v1834_v13 = vmul.f32 %v1832_v6, %v1828_v7 }
 0xf39   :  { %v1833_v16 = vmul.f32 %v1832_v6, %v1827_v12  ;;  %v1840_v14 = vadd.f32 %v1838_v9, %v1834_v13 }
 0xf3b   :  { %v1839_v18 = vadd.f32 %v1838_v9, %v1833_v16  ;;  %1842 = vst.msk [vmem:[#allocation5 + $0x8] sm:$0xff] %vm49_vm0, %v1840_v14 }
 0xf3d   :  { %1841 = vst.msk [vmem:[#allocation5] sm:$0xff] %vm49_vm0, %v1839_v18 }
 0xf3e   :  { %2174 = shalt.err (!%p2171_p9)
}
 0xf3f   :  { %1854 = dma.vmem_to_hbm [thread:$0]  %s1849_s7, 256, %s2504_s6, [#allocation4], %s2188_s24, %s2188_s24, %s2189_s25  }
 0xf40   :  { %2185 = dma.done.wait [#allocation4], 256  }
 0xf41   :  { %2186 = vsyncadd [#allocation4], 4294967040 }
 0xf42   :  { %1858 = vsyncpa [#allocation3], 1 }
 0xf43   :  { %1859 = vsyncpa [#allocation4], 1 }

</bundles_post_ra>
